<compile_context>
chip_gen: v6e
topology: v6e:2x2x1
jax: 0.10.0
libtpu: 0.0.40
codegen_flags: <defaults>
</compile_context>

<pallas_src>
import functools

import jax
import jax.numpy as jnp
import numpy as np
from jax import lax
from jax.experimental import pallas as pl
from jax.experimental.pallas import tpu as pltpu


# --------------------------- tiling / VMEM helpers ---------------------------

def _pick_tile(n, target, multiples=(256, 128, 16, 8)):
    """Largest tile <= target that divides n and is a multiple of one of
    `multiples` (tried in order: MXU-friendliest alignment first).  Falls back
    to a single full-extent tile when n has no usable divisor."""
    if n <= target:
        return n
    for m in multiples:
        t = (target // m) * m
        while t >= m:
            if n % t == 0:
                return t
            t -= m
    return n


def _vmem_budget_bytes():
    """Physical VMEM per TensorCore; conservative (v7x = 64 MiB) if unknown."""
    try:
        info = pltpu.get_tpu_info()
        cap = getattr(info, "vmem_capacity_bytes", None)
        if cap:
            return int(cap)
    except Exception:
        pass
    return 64 * 1024 * 1024


def _pass3_vmem_estimate(tq, kv_len, C):
    """Rough resident-VMEM bytes for pass 3: double-buffered blocks + scratch
    + the dominant f32 intermediates (score tile / exp)."""
    bf16, f32 = 2, 4
    est = 2 * tq * C * bf16                 # q blocks
    est += 2 * kv_len * C * bf16 * 2        # k and v blocks
    est += 2 * tq * C * f32                 # x (residual) blocks
    est += 2 * tq * C * f32                 # out blocks
    est += 2 * C * C * bf16                 # wp
    est += tq * C * f32                     # f32 accumulator
    est += 2 * tq * kv_len * f32            # score tile + exp intermediate
    return est


# ---------------------------------------------------------------------------
# Pass 1: GroupNorm statistics.  grid = (B, HW // thw); HW-tile axis is the
# reduction.  Produces per-batch per-channel affine (scale, shift) such that
#   h = x * scale + shift  ==  GroupNorm(32, C)(x) (with weight/bias folded in).
# ---------------------------------------------------------------------------
def _gn_stats_kernel(x_ref, gmask_ref, gamma_ref, beta_ref, stats_ref,
                     sum_sc, sq_sc, *, inv_count, eps):
    t = pl.program_id(1)

    @pl.when(t == 0)
    def _():
        sum_sc[...] = jnp.zeros_like(sum_sc)
        sq_sc[...] = jnp.zeros_like(sq_sc)

    x = x_ref[0]                                              # (thw, C) f32
    sum_sc[...] += jnp.sum(x, axis=0, keepdims=True)          # (1, C)
    sq_sc[...] += jnp.sum(x * x, axis=0, keepdims=True)       # (1, C)

    @pl.when(t == pl.num_programs(1) - 1)
    def _():
        M = gmask_ref[...]                                    # (C, G) one-hot
        sum_g = jnp.dot(sum_sc[...], M, preferred_element_type=jnp.float32)
        sq_g = jnp.dot(sq_sc[...], M, preferred_element_type=jnp.float32)
        mean_g = sum_g * inv_count                            # (1, G)
        # E[x^2]-E[x]^2 in one pass; clamp guards tiny negatives from
        # cancellation.  TODO(synk): switch to a two-pass centered sum of
        # squares if |mean| >> std on real activations.
        var_g = jnp.maximum(sq_g * inv_count - mean_g * mean_g, 0.0)
        inv_g = lax.rsqrt(var_g + eps)
        # broadcast group stats back to channels: (1,G) . (C,G)^T -> (1,C)
        dn = (((1,), (1,)), ((), ()))
        mean_c = lax.dot_general(mean_g, M, dn, preferred_element_type=jnp.float32)
        inv_c = lax.dot_general(inv_g, M, dn, preferred_element_type=jnp.float32)
        scale_c = gamma_ref[...] * inv_c                      # (1, C)
        shift_c = beta_ref[...] - mean_c * scale_c            # (1, C)
        stats_ref[0] = jnp.concatenate([scale_c, shift_c], axis=0)   # (2, C)


# ---------------------------------------------------------------------------
# Pass 2: fused normalization + QKV projection (one wide (C, 3C) bf16 matmul).
# grid = (B, HW // thw).  Outputs q / k / v in bf16 (halves HBM traffic and
# feeds the MXU in pass 3 at full bf16 rate).  q already carries C^-0.5.
# ---------------------------------------------------------------------------
def _qkv_kernel(x_ref, stats_ref, wqkv_ref, bqkv_ref, q_ref, k_ref, v_ref):
    C = q_ref.shape[-1]
    st = stats_ref[0]                                         # (2, C)
    h = x_ref[0] * st[0:1, :] + st[1:2, :]                    # (thw, C) f32
    qkv = jnp.dot(h.astype(jnp.bfloat16), wqkv_ref[...],
                  preferred_element_type=jnp.float32) + bqkv_ref[...]   # (thw, 3C)
    q_ref[0] = qkv[:, :C].astype(q_ref.dtype)
    k_ref[0] = qkv[:, C:2 * C].astype(k_ref.dtype)
    v_ref[0] = qkv[:, 2 * C:].astype(v_ref.dtype)


# ---------------------------------------------------------------------------
# Pass 3a: K/V-resident single-shot attention (tk == HW).
# grid = (B, HW // tq).  K/V blocks have constant index across qi, so they are
# DMA'd once per batch; softmax is single-shot (no online rescale).
# ---------------------------------------------------------------------------
def _attn_single_kernel(q_ref, k_ref, v_ref, x_ref, wp_ref, bp_ref, o_ref):
    q = q_ref[0]                                              # (tq, C) bf16, pre-scaled
    k = k_ref[0]                                              # (HW, C) bf16
    # q . k^T without materializing k^T: contract dim 1 of both operands.
    s = lax.dot_general(q, k, (((1,), (1,)), ((), ())),
                        preferred_element_type=jnp.float32)   # (tq, HW)
    m = jnp.max(s, axis=-1, keepdims=True)
    p = jnp.exp(s - m)
    l = jnp.sum(p, axis=-1, keepdims=True)
    ho = jnp.dot(p.astype(jnp.bfloat16), v_ref[0],
                 preferred_element_type=jnp.float32)          # (tq, C) f32
    ho = ho * pl.reciprocal(l, approx=True)
    out = jnp.dot(ho.astype(jnp.bfloat16), wp_ref[...],
                  preferred_element_type=jnp.float32) + bp_ref[...]
    o_ref[0] = x_ref[0] + out


# ---------------------------------------------------------------------------
# Pass 3b: flash-attention fallback (K/V too large for residency).
# grid = (B, HW // tq, HW // tk); k-tile axis last ("arbitrary" reduction).
# ---------------------------------------------------------------------------
def _flash_attn_kernel(q_ref, k_ref, v_ref, x_ref, wp_ref, bp_ref, o_ref,
                       m_sc, l_sc, acc_sc):
    ki = pl.program_id(2)

    @pl.when(ki == 0)
    def _():
        m_sc[...] = jnp.full_like(m_sc, -jnp.inf)
        l_sc[...] = jnp.zeros_like(l_sc)
        acc_sc[...] = jnp.zeros_like(acc_sc)

    q = q_ref[0]                                              # (tq, C) bf16, pre-scaled
    k = k_ref[0]                                              # (tk, C) bf16
    s = lax.dot_general(q, k, (((1,), (1,)), ((), ())),
                        preferred_element_type=jnp.float32)   # (tq, tk)

    m_prev = m_sc[...]
    m_new = jnp.maximum(m_prev, jnp.max(s, axis=-1, keepdims=True))
    alpha = jnp.exp(m_prev - m_new)
    p = jnp.exp(s - m_new)
    l_sc[...] = alpha * l_sc[...] + jnp.sum(p, axis=-1, keepdims=True)
    acc_sc[...] = alpha * acc_sc[...] + jnp.dot(
        p.astype(jnp.bfloat16), v_ref[0], preferred_element_type=jnp.float32)
    m_sc[...] = m_new

    @pl.when(ki == pl.num_programs(2) - 1)
    def _():
        ho = acc_sc[...] * pl.reciprocal(l_sc[...], approx=True)      # (tq, C) f32
        out = jnp.dot(ho.astype(jnp.bfloat16), wp_ref[...],
                      preferred_element_type=jnp.float32) + bp_ref[...]
        o_ref[0] = x_ref[0] + out


# ------------------------------- wrapper -------------------------------------

def attn_block_pallas(x_nchw, params, num_groups=32):
    """x_nchw: (B, C, H, W) float32. Returns (B, C, H, W)."""
    B, C, H, W = x_nchw.shape
    HW = H * W
    G = num_groups
    assert C % G == 0

    # TODO(synk): drop these NCHW<->NHWC transposes (each is a full HBM round
    # trip in XLA) if neighbouring ops can produce/consume NHWC directly.
    x = jnp.transpose(x_nchw, (0, 2, 3, 1)).reshape(B, HW, C).astype(jnp.float32)

    # One-hot channel -> group assignment matrix (C, G)
    gmask = (jnp.arange(C)[:, None] // (C // G)
             == jnp.arange(G)[None, :]).astype(jnp.float32)

    gamma = params["gamma"].reshape(1, C).astype(jnp.float32)
    beta = params["beta"].reshape(1, C).astype(jnp.float32)

    # Fold the attention scale C^-0.5 into wq/bq so the attention inner loop
    # carries no per-step (tq x tk) scaling multiply.
    att_scale = float(C) ** (-0.5)
    wqkv = jnp.concatenate(
        [params["wq"].T * att_scale, params["wk"].T, params["wv"].T],
        axis=1).astype(jnp.bfloat16)
    bqkv = jnp.concatenate(
        [params["bq"] * att_scale, params["bk"], params["bv"]]
    ).reshape(1, 3 * C).astype(jnp.float32)
    wp = params["wp"].T.astype(jnp.bfloat16)
    bp = params["bp"].reshape(1, C).astype(jnp.float32)

    # Per-generation VMEM budget (v5e/v6e: 128 MiB, v7x: 64 MiB; conservative
    # default 64 MiB when unknown).  Explicit limits on every pass.
    budget = _vmem_budget_bytes()
    vmem_limit = int(min(budget * 3 // 4, 100 * 1024 * 1024))

    thw = _pick_tile(HW, 1024)   # HW tile for mem-bound norm/QKV passes
    tq = _pick_tile(HW, 512)     # q-tile (256-aligned preferred for MXU)
    # NOTE(v7x): keeping B * (HW // tq) even splits the parallel grid evenly
    # across the 2 TensorCores; adjust tq if the tail-core cost matters.

    # K/V residency: collapse the k-tile axis (tk = HW) when the resident
    # working set fits comfortably; otherwise MXU-aligned flash tiling.
    kv_resident = _pass3_vmem_estimate(tq, HW, C) <= int(0.7 * vmem_limit)
    if kv_resident:
        tk = HW
    else:
        tk = _pick_tile(HW, 512)
        assert _pass3_vmem_estimate(tq, tk, C) <= vmem_limit, (
            f"pass-3 tiles exceed VMEM budget (tq={tq}, tk={tk}, C={C}, "
            f"HW={HW}); shrink tq/tk or pad HW to a friendlier size")

    # ---- Pass 1: GroupNorm statistics -> per-batch (scale, shift) ----------
    stats = pl.pallas_call(
        functools.partial(_gn_stats_kernel,
                          inv_count=1.0 / float(HW * (C // G)), eps=1e-5),
        out_shape=jax.ShapeDtypeStruct((B, 2, C), jnp.float32),
        grid_spec=pltpu.PrefetchScalarGridSpec(
            num_scalar_prefetch=0,
            grid=(B, HW // thw),
            in_specs=[
                pl.BlockSpec((1, thw, C), lambda b, t: (b, t, 0)),  # x
                pl.BlockSpec((C, G), lambda b, t: (0, 0)),          # group mask
                pl.BlockSpec((1, C), lambda b, t: (0, 0)),          # gamma
                pl.BlockSpec((1, C), lambda b, t: (0, 0)),          # beta
            ],
            out_specs=pl.BlockSpec((1, 2, C), lambda b, t: (b, 0, 0)),
            scratch_shapes=[pltpu.VMEM((1, C), jnp.float32),
                            pltpu.VMEM((1, C), jnp.float32)],
        ),
        compiler_params=pltpu.CompilerParams(
            dimension_semantics=("parallel", "arbitrary"),
            vmem_limit_bytes=vmem_limit),
    )(x, gmask, gamma, beta)

    # ---- Pass 2: normalization + fused QKV projection (bf16 outputs) -------
    q, k, v = pl.pallas_call(
        _qkv_kernel,
        out_shape=(jax.ShapeDtypeStruct((B, HW, C), jnp.bfloat16),) * 3,
        grid_spec=pltpu.PrefetchScalarGridSpec(
            num_scalar_prefetch=0,
            grid=(B, HW // thw),
            in_specs=[
                pl.BlockSpec((1, thw, C), lambda b, t: (b, t, 0)),   # x
                pl.BlockSpec((1, 2, C), lambda b, t: (b, 0, 0)),     # stats
                pl.BlockSpec((C, 3 * C), lambda b, t: (0, 0)),       # wqkv
                pl.BlockSpec((1, 3 * C), lambda b, t: (0, 0)),       # bqkv
            ],
            out_specs=[pl.BlockSpec((1, thw, C), lambda b, t: (b, t, 0))] * 3,
        ),
        compiler_params=pltpu.CompilerParams(
            dimension_semantics=("parallel", "parallel"),
            vmem_limit_bytes=vmem_limit),
    )(x, stats, wqkv, bqkv)

    # ---- Pass 3: attention + output projection + residual ------------------
    if kv_resident:
        out = pl.pallas_call(
            _attn_single_kernel,
            out_shape=jax.ShapeDtypeStruct((B, HW, C), jnp.float32),
            grid_spec=pltpu.PrefetchScalarGridSpec(
                num_scalar_prefetch=0,
                grid=(B, HW // tq),
                in_specs=[
                    pl.BlockSpec((1, tq, C), lambda b, qi: (b, qi, 0)),   # q
                    pl.BlockSpec((1, HW, C), lambda b, qi: (b, 0, 0)),    # k (resident)
                    pl.BlockSpec((1, HW, C), lambda b, qi: (b, 0, 0)),    # v (resident)
                    pl.BlockSpec((1, tq, C), lambda b, qi: (b, qi, 0)),   # x (residual)
                    pl.BlockSpec((C, C), lambda b, qi: (0, 0)),           # wp
                    pl.BlockSpec((1, C), lambda b, qi: (0, 0)),           # bp
                ],
                out_specs=pl.BlockSpec((1, tq, C), lambda b, qi: (b, qi, 0)),
            ),
            compiler_params=pltpu.CompilerParams(
                dimension_semantics=("parallel", "parallel"),
                vmem_limit_bytes=vmem_limit),
        )(q, k, v, x, wp, bp)
    else:
        out = pl.pallas_call(
            _flash_attn_kernel,
            out_shape=jax.ShapeDtypeStruct((B, HW, C), jnp.float32),
            grid_spec=pltpu.PrefetchScalarGridSpec(
                num_scalar_prefetch=0,
                grid=(B, HW // tq, HW // tk),
                in_specs=[
                    pl.BlockSpec((1, tq, C), lambda b, qi, ki: (b, qi, 0)),  # q
                    pl.BlockSpec((1, tk, C), lambda b, qi, ki: (b, ki, 0)),  # k
                    pl.BlockSpec((1, tk, C), lambda b, qi, ki: (b, ki, 0)),  # v
                    pl.BlockSpec((1, tq, C), lambda b, qi, ki: (b, qi, 0)),  # x (residual)
                    pl.BlockSpec((C, C), lambda b, qi, ki: (0, 0)),          # wp
                    pl.BlockSpec((1, C), lambda b, qi, ki: (0, 0)),          # bp
                ],
                out_specs=pl.BlockSpec((1, tq, C), lambda b, qi, ki: (b, qi, 0)),
                scratch_shapes=[pltpu.VMEM((tq, 1), jnp.float32),   # running max
                                pltpu.VMEM((tq, 1), jnp.float32),   # running sum
                                pltpu.VMEM((tq, C), jnp.float32)],  # accumulator
            ),
            compiler_params=pltpu.CompilerParams(
                dimension_semantics=("parallel", "parallel", "arbitrary"),
                vmem_limit_bytes=vmem_limit),
        )(q, k, v, x, wp, bp)

    # (B, HW, C) -> NCHW
    return jnp.transpose(out.reshape(B, H, W, C), (0, 3, 1, 2)).astype(x_nchw.dtype)


def attn_block_ref(x_nchw, params, num_groups=32):
    """Pure-JAX f32 reference mirroring the PyTorch forward (for verification)."""
    B, C, H, W = x_nchw.shape
    G = num_groups
    x = x_nchw
    xg = x.reshape(B, G, C // G, H, W)
    mean = jnp.mean(xg, axis=(2, 3, 4), keepdims=True)
    var = jnp.mean((xg - mean) ** 2, axis=(2, 3, 4), keepdims=True)
    h = ((xg - mean) / jnp.sqrt(var + 1e-5)).reshape(B, C, H, W)
    h = h * params["gamma"][None, :, None, None] + params["beta"][None, :, None, None]

    def conv1x1(t, w, b):
        return jnp.einsum("bchw,oc->bohw", t, w) + b[None, :, None, None]

    q = conv1x1(h, params["wq"], params["bq"])
    k = conv1x1(h, params["wk"], params["bk"])
    v = conv1x1(h, params["wv"], params["bv"])
    q = jnp.transpose(q, (0, 2, 3, 1)).reshape(B, H * W, C)
    k = k.reshape(B, C, H * W)
    w = jnp.einsum("bic,bcj->bij", q, k) * (float(C) ** (-0.5))
    w = jax.nn.softmax(w, axis=-1)
    v = jnp.transpose(v, (0, 2, 3, 1)).reshape(B, H * W, C)
    ho = jnp.einsum("bij,bjc->bic", w, v)
    ho = jnp.transpose(ho.reshape(B, H, W, C), (0, 3, 1, 2))
    ho = conv1x1(ho, params["wp"], params["bp"])
    return x + ho


if __name__ == "__main__":
    # in_ch must be divisible by 32 (GroupNorm(32, C)); C=128 keeps the last
    # dim of every block lane-dense (unmasked stores, full MXU lanes).
    B, C, H, W = 2, 128, 8, 8

    key = jax.random.PRNGKey(0)
    keys = jax.random.split(key, 12)
    scale = 1.0 / np.sqrt(C)
    params = {
        "gamma": 1.0 + 0.1 * jax.random.normal(keys[0], (C,), jnp.float32),
        "beta": 0.1 * jax.random.normal(keys[1], (C,), jnp.float32),
        "wq": scale * jax.random.normal(keys[2], (C, C), jnp.float32),
        "bq": 0.05 * jax.random.normal(keys[3], (C,), jnp.float32),
        "wk": scale * jax.random.normal(keys[4], (C, C), jnp.float32),
        "bk": 0.05 * jax.random.normal(keys[5], (C,), jnp.float32),
        "wv": scale * jax.random.normal(keys[6], (C, C), jnp.float32),
        "bv": 0.05 * jax.random.normal(keys[7], (C,), jnp.float32),
        "wp": scale * jax.random.normal(keys[8], (C, C), jnp.float32),
        "bp": 0.05 * jax.random.normal(keys[9], (C,), jnp.float32),
    }
    x = jax.random.normal(keys[10], (B, C, H, W), jnp.float32)

    out = jax.block_until_ready(attn_block_pallas(x, params))
    ref = jax.block_until_ready(attn_block_ref(x, params))

    # bf16 MXU inputs (f32 accumulation) + approx reciprocal on the softmax
    # denominator -> relaxed tolerance vs the f32 reference.
    np.testing.assert_allclose(np.asarray(out), np.asarray(ref), rtol=5e-2, atol=5e-2)
    print("KERNEL_OK")
</pallas_src>

<mosaic_0001>
module attributes {stable_mosaic.version = 11 : i64} {
  func.func @_gn_stats_kernel(%arg0: i32, %arg1: i32, %arg2: memref<1x64x128xf32, #tpu.memory_space<vmem>>, %arg3: memref<128x32xf32, #tpu.memory_space<vmem>>, %arg4: memref<1x128xf32, #tpu.memory_space<vmem>>, %arg5: memref<1x128xf32, #tpu.memory_space<vmem>>, %arg6: memref<1x2x128xf32, #tpu.memory_space<vmem>>, %arg7: memref<1x128xf32, #tpu.memory_space<vmem>>, %arg8: memref<1x128xf32, #tpu.memory_space<vmem>>) attributes {dimension_semantics = [#tpu.dimension_semantics<parallel>, #tpu.dimension_semantics<arbitrary>], iteration_bounds = array<i64: 2, 1>, scalar_prefetch = 0 : i64, scratch_operands = 2 : i64, tpu.core_type = #tpu.core_type<tc>, window_params = [{transform_indices = @transform_0, window_bounds = array<i64: 1, 64, 128>}, {pipeline_mode = #tpu.pipeline_mode<synchronous>, transform_indices = @transform_1, window_bounds = array<i64: 128, 32>}, {pipeline_mode = #tpu.pipeline_mode<synchronous>, transform_indices = @transform_2, window_bounds = array<i64: 1, 128>}, {pipeline_mode = #tpu.pipeline_mode<synchronous>, transform_indices = @transform_3, window_bounds = array<i64: 1, 128>}, {transform_indices = @transform_4, window_bounds = array<i64: 1, 2, 128>}]} {
    %c0_i32 = arith.constant 0 : i32
    %0 = arith.cmpi eq, %arg1, %c0_i32 : i32
    %1 = arith.extui %0 : i1 to i32
    %c0_i32_0 = arith.constant 0 : i32
    %2 = arith.cmpi ne, %1, %c0_i32_0 : i32
    scf.if %2 {
      %cst_14 = arith.constant 0.000000e+00 : f32
      %19 = vector.broadcast %cst_14 : f32 to vector<1x128xf32>
      %c0_15 = arith.constant 0 : index
      %c0_16 = arith.constant 0 : index
      %20 = vector.load %arg7[%c0_15, %c0_16] : memref<1x128xf32, #tpu.memory_space<vmem>>, vector<1x128xf32>
      tpu.vector_store %arg7[%c0_15, %c0_16], %19 {strides = array<i32>} : memref<1x128xf32, #tpu.memory_space<vmem>>, vector<1x128xf32>,
      %cst_17 = arith.constant 0.000000e+00 : f32
      %21 = vector.broadcast %cst_17 : f32 to vector<1x128xf32>
      %c0_18 = arith.constant 0 : index
      %c0_19 = arith.constant 0 : index
      %22 = vector.load %arg8[%c0_18, %c0_19] : memref<1x128xf32, #tpu.memory_space<vmem>>, vector<1x128xf32>
      tpu.vector_store %arg8[%c0_18, %c0_19], %21 {strides = array<i32>} : memref<1x128xf32, #tpu.memory_space<vmem>>, vector<1x128xf32>,
    } else {
    }
    %c0 = arith.constant 0 : index
    %c0_1 = arith.constant 0 : index
    %c0_2 = arith.constant 0 : index
    %3 = vector.load %arg2[%c0, %c0_1, %c0_2] : memref<1x64x128xf32, #tpu.memory_space<vmem>>, vector<1x64x128xf32>
    %4 = vector.shape_cast %3 : vector<1x64x128xf32> to vector<64x128xf32>
    %c0_3 = arith.constant 0 : index
    %c0_4 = arith.constant 0 : index
    %5 = vector.load %arg7[%c0_3, %c0_4] : memref<1x128xf32, #tpu.memory_space<vmem>>, vector<1x128xf32>
    %cst = arith.constant dense<0.000000e+00> : vector<128xf32>
    %6 = vector.multi_reduction <add>, %4, %cst [0] : vector<64x128xf32> to vector<128xf32>
    %7 = vector.shape_cast %6 : vector<128xf32> to vector<1x128xf32>
    %8 = arith.addf %5, %7 : vector<1x128xf32>
    %c0_5 = arith.constant 0 : index
    %c0_6 = arith.constant 0 : index
    %9 = vector.load %arg7[%c0_5, %c0_6] : memref<1x128xf32, #tpu.memory_space<vmem>>, vector<1x128xf32>
    tpu.vector_store %arg7[%c0_5, %c0_6], %8 {strides = array<i32>} : memref<1x128xf32, #tpu.memory_space<vmem>>, vector<1x128xf32>,
    %c0_7 = arith.constant 0 : index
    %c0_8 = arith.constant 0 : index
    %10 = vector.load %arg8[%c0_7, %c0_8] : memref<1x128xf32, #tpu.memory_space<vmem>>, vector<1x128xf32>
    %11 = arith.mulf %4, %4 : vector<64x128xf32>
    %cst_9 = arith.constant dense<0.000000e+00> : vector<128xf32>
    %12 = vector.multi_reduction <add>, %11, %cst_9 [0] : vector<64x128xf32> to vector<128xf32>
    %13 = vector.shape_cast %12 : vector<128xf32> to vector<1x128xf32>
    %14 = arith.addf %10, %13 : vector<1x128xf32>
    %c0_10 = arith.constant 0 : index
    %c0_11 = arith.constant 0 : index
    %15 = vector.load %arg8[%c0_10, %c0_11] : memref<1x128xf32, #tpu.memory_space<vmem>>, vector<1x128xf32>
    tpu.vector_store %arg8[%c0_10, %c0_11], %14 {strides = array<i32>} : memref<1x128xf32, #tpu.memory_space<vmem>>, vector<1x128xf32>,
    %c0_i32_12 = arith.constant 0 : i32
    %16 = arith.cmpi eq, %arg1, %c0_i32_12 : i32
    %17 = arith.extui %16 : i1 to i32
    %c0_i32_13 = arith.constant 0 : i32
    %18 = arith.cmpi ne, %17, %c0_i32_13 : i32
    scf.if %18 {
      %c0_14 = arith.constant 0 : index
      %c0_15 = arith.constant 0 : index
      %19 = vector.load %arg3[%c0_14, %c0_15] : memref<128x32xf32, #tpu.memory_space<vmem>>, vector<128x32xf32>
      %c0_16 = arith.constant 0 : index
      %c0_17 = arith.constant 0 : index
      %20 = vector.load %arg7[%c0_16, %c0_17] : memref<1x128xf32, #tpu.memory_space<vmem>>, vector<1x128xf32>
      %cst_18 = arith.constant dense<0.000000e+00> : vector<1x32xf32>
      %21 = tpu.matmul %20, %19, %cst_18 {dimension_numbers = #tpu.dot_dimension_numbers<[1], [0], [0], [1], [0, 0, 1, 1], [], []>} : vector<1x128xf32>, vector<128x32xf32>, vector<1x32xf32> -> vector<1x32xf32>
      %c0_19 = arith.constant 0 : index
      %c0_20 = arith.constant 0 : index
      %22 = vector.load %arg8[%c0_19, %c0_20] : memref<1x128xf32, #tpu.memory_space<vmem>>, vector<1x128xf32>
      %cst_21 = arith.constant dense<0.000000e+00> : vector<1x32xf32>
      %23 = tpu.matmul %22, %19, %cst_21 {dimension_numbers = #tpu.dot_dimension_numbers<[1], [0], [0], [1], [0, 0, 1, 1], [], []>} : vector<1x128xf32>, vector<128x32xf32>, vector<1x32xf32> -> vector<1x32xf32>
      %cst_22 = arith.constant 3.906250e-03 : f32
      %24 = vector.broadcast %cst_22 : f32 to vector<1x32xf32>
      %25 = arith.mulf %21, %24 : vector<1x32xf32>
      %cst_23 = arith.constant 3.906250e-03 : f32
      %26 = vector.broadcast %cst_23 : f32 to vector<1x32xf32>
      %27 = arith.mulf %23, %26 : vector<1x32xf32>
      %28 = arith.mulf %25, %25 : vector<1x32xf32>
      %29 = arith.subf %27, %28 : vector<1x32xf32>
      %cst_24 = arith.constant 0.000000e+00 : f32
      %30 = vector.broadcast %cst_24 : f32 to vector<1x32xf32>
      %31 = arith.maximumf %29, %30 : vector<1x32xf32>
      %cst_25 = arith.constant 9.99999974E-6 : f32
      %32 = vector.broadcast %cst_25 : f32 to vector<1x32xf32>
      %33 = arith.addf %31, %32 : vector<1x32xf32>
      %34 = math.rsqrt %33 : vector<1x32xf32>
      %cst_26 = arith.constant dense<0.000000e+00> : vector<1x128xf32>
      %35 = tpu.matmul %25, %19, %cst_26 {dimension_numbers = #tpu.dot_dimension_numbers<[1], [1], [0], [0], [0, 0, 1, 0], [], []>} : vector<1x32xf32>, vector<128x32xf32>, vector<1x128xf32> -> vector<1x128xf32>
      %cst_27 = arith.constant dense<0.000000e+00> : vector<1x128xf32>
      %36 = tpu.matmul %34, %19, %cst_27 {dimension_numbers = #tpu.dot_dimension_numbers<[1], [1], [0], [0], [0, 0, 1, 0], [], []>} : vector<1x32xf32>, vector<128x32xf32>, vector<1x128xf32> -> vector<1x128xf32>
      %c0_28 = arith.constant 0 : index
      %c0_29 = arith.constant 0 : index
      %37 = vector.load %arg4[%c0_28, %c0_29] : memref<1x128xf32, #tpu.memory_space<vmem>>, vector<1x128xf32>
      %38 = arith.mulf %37, %36 : vector<1x128xf32>
      %c0_30 = arith.constant 0 : index
      %c0_31 = arith.constant 0 : index
      %39 = vector.load %arg5[%c0_30, %c0_31] : memref<1x128xf32, #tpu.memory_space<vmem>>, vector<1x128xf32>
      %40 = arith.mulf %35, %38 : vector<1x128xf32>
      %41 = arith.subf %39, %40 : vector<1x128xf32>
      %42 = tpu.concatenate %38, %41 in 0 : vector<1x128xf32>, vector<1x128xf32> -> vector<2x128xf32>
      %c0_32 = arith.constant 0 : index
      %c0_33 = arith.constant 0 : index
      %c0_34 = arith.constant 0 : index
      %43 = vector.load %arg6[%c0_32, %c0_33, %c0_34] : memref<1x2x128xf32, #tpu.memory_space<vmem>>, vector<1x2x128xf32>
      %44 = vector.shape_cast %43 : vector<1x2x128xf32> to vector<2x128xf32>
      %45 = vector.shape_cast %42 : vector<2x128xf32> to vector<1x2x128xf32>
      tpu.vector_store %arg6[%c0_32, %c0_33, %c0_34], %45 {strides = array<i32>} : memref<1x2x128xf32, #tpu.memory_space<vmem>>, vector<1x2x128xf32>,
    } else {
    }
    return
  }
  func.func @transform_0(%arg0: i32, %arg1: i32) -> (i32, i32, i32) {
    %c0_i32 = arith.constant 0 : i32
    %c0_i32_0 = arith.constant 0 : i32
    return %arg0, %arg1, %c0_i32 : i32, i32, i32
  }
  func.func @transform_1(%arg0: i32, %arg1: i32) -> (i32, i32) {
    %c0_i32 = arith.constant 0 : i32
    %c0_i32_0 = arith.constant 0 : i32
    %c0_i32_1 = arith.constant 0 : i32
    return %c0_i32, %c0_i32_0 : i32, i32
  }
  func.func @transform_2(%arg0: i32, %arg1: i32) -> (i32, i32) {
    %c0_i32 = arith.constant 0 : i32
    %c0_i32_0 = arith.constant 0 : i32
    %c0_i32_1 = arith.constant 0 : i32
    return %c0_i32, %c0_i32_0 : i32, i32
  }
  func.func @transform_3(%arg0: i32, %arg1: i32) -> (i32, i32) {
    %c0_i32 = arith.constant 0 : i32
    %c0_i32_0 = arith.constant 0 : i32
    %c0_i32_1 = arith.constant 0 : i32
    return %c0_i32, %c0_i32_0 : i32, i32
  }
  func.func @transform_4(%arg0: i32, %arg1: i32) -> (i32, i32, i32) {
    %c0_i32 = arith.constant 0 : i32
    %c0_i32_0 = arith.constant 0 : i32
    %c0_i32_1 = arith.constant 0 : i32
    return %arg0, %c0_i32, %c0_i32_0 : i32, i32, i32
  }
}

</mosaic_0001>

<bundles_post_ra>
// kernel: tpu_custom_call.1
= control target key start
LH: loop header
LB: loop body
LE: loop exit
PB: predicated region body
PF: predicated region fallthrough
CT: control target
= control target key end

     0   :  { %9 = vsyncpa [#allocation5], 0  ;;  %s1535_s0 = inlined_call_operand.vmem [shape: f32[2,64,128], index: 0, kind: input, shape index: {}]   ;;  %s1536_s1 = inlined_call_operand.vmem [shape: f32[128,32], index: 1, kind: input, shape index: {}]   ;;  %s1537_s2 = inlined_call_operand.vmem [shape: f32[1,128], index: 2, kind: input, shape index: {}]   ;;  %s1538_s3 = inlined_call_operand.vmem [shape: f32[1,128], index: 3, kind: input, shape index: {}]   ;;  %s1539_s4 = inlined_call_operand.hbm [shape: f32[2,2,128], index: 4, kind: output, shape index: {}]  }
   0x1   :  { %11 = vsyncpa [#allocation5 + $0x1], 0  ;;  %s1162_s15 = smov 0   ;;  %s1164_s16 = smov 0  }
   0x2   :  { %s1166_s17 = smov 0   ;;  %s1168_s18 = smov 0  }
   0x3   :  { %s1170_s19 = smov 0   ;;  %s1172_s20 = smov 0  }
   0x4 LB: > { %s742_s21 = sadd.s32 4294967295, %s1132_s20   ;;  %s743_s22 = sadd.s32 4294967294, %s1132_s20   ;;  %s1132_s20 = sphi %s1172_s20, %s17_s20   ;;  %s1128_s19 = sphi %s1170_s19, %s1546_s19   ;;  %s1124_s18 = sphi %s1168_s18, %s1545_s18   ;;  %s1120_s17 = sphi %s1166_s17, %s1544_s17   ;;  %s1116_s16 = sphi %s1164_s16, %s1543_s16   ;;  %s1112_s15 = sphi %s1162_s15, %s1542_s15  }
   0x5   : > { %s29_s23 = sadd.s32 1, %s1128_s19  ;;  %s127_s24 = sadd.s32 1, %s1120_s17 }
   0x6   : > { %p31_p0 = scmp.ge.s32.totalorder %s29_s23, 2  ;;  %p137_p1 = scmp.ne.s32.totalorder %s1120_s17, %s1116_s16 }
   0x7   : > { %p138_p2 = scmp.eq.s32.totalorder %s742_s21, 1  ;;  %p143_p3 = scmp.ne.s32.totalorder %s1116_s16, %s1112_s15 }
   0x8   : > { %s1548_s23 = smov (%p31_p0, %s29_s23), 0  ;;  %p144_p5 = scmp.eq.s32.totalorder %s743_s22, 1 }
   0x9   : > { %p1202_p4 = por %p138_p2, %p137_p1  ;;  %s124_s26 = ssub.s32 %s1128_s19, %s1548_s23 }
   0xa   : > { %p746_p6 = scmp.ge.s32.totalorder %s1132_s20, 1  ;;  %p125_p7 = scmp.eq.s32.totalorder %s124_s26, 0 }
   0xb   : > { %p1209_p8 = por %p144_p5, %p143_p3  ;;  %p184_p9 = scmp.lt.s32.totalorder %s1132_s20, 3 }
   0xc   : > { %s1215_s28 = scalar_select %p125_p7, %s1120_s17, %s127_s24  }
   0xd   : > { %p185_p10 = pnand %p746_p6, %p184_p9 }
   0xe   : > { %p215_p11 = scmp.lt.s32.totalorder (!%p185_p10), %s1124_s18, 1  ;;  %s211_s8 = sand.u32 (!%p185_p10), 1, %s1116_s16  }
   0xf   : > { %188 = sbr.rel (%p185_p10) target bundleno = 493 (0x1ed), region = 36  ;;  %s747_s11 = sshll.u32 (!%p185_p10), %s211_s8, 1 }
  0x10   : > { %s785_s14 = sshll.u32 (!%p185_p10), %s1124_s18, 5  ;;  %s656_s30 = scalar_lea.sflag (!%p185_p10), [#allocation5], %s211_s8 }
  0x11   : > { %s1495_s29 = scalar_lea.hbm (!%p185_p10), %s1539_s4, %s785_s14  ;;  %s1136_s6 = smov (!%p185_p10), [#allocation4]  }
  0x14   : > { %v1220_v0 = vld [vmem:[%s1536_s1 + $0x78] sm:$0xff]  ;;  %v1134_v1 = vmov 0.0   ;;  %v1230_v2 = vld [vmem:[%s1536_s1 + $0x70] sm:$0xff]  ;;  %s216_s7 = scalar_select %p215_p11, %s1124_s18, 1  ;;  %v1240_v3 = vld [vmem:[%s1536_s1 + $0x68] sm:$0xff]  ;;  %vm1135_vm0 = vmmov 0  }
  0x15   : > { %857 = vmatprep.subr.mxu0 %v1134_v1  ;;  %228 = vst [vmem:[#allocation2] sm:$0x1] %v1134_v1  ;;  %229 = vst [vmem:[#allocation3] sm:$0x1] %v1134_v1  ;;  %892 = vmatprep.subr.mxu1 %v1134_v1  ;;  %v1249_v4 = vld [vmem:[%s1536_s1 + $0x60] sm:$0xff]  ;;  %v1266_v8 = vld [vmem:[%s1536_s1 + $0x58] sm:$0xff] }
  0x16   : > { %858 = vmatpush3.msra.mxu0 %v1220_v0  ;;  %893 = vmatpush3.msra.mxu1 %v1220_v0  ;;  %s788_s10 = sshll.u32 %s216_s7, 6  ;;  %v1276_v14 = vld [vmem:[%s1536_s1 + $0x50] sm:$0xff]  ;;  %v1286_v19 = vld [vmem:[%s1536_s1 + $0x48] sm:$0xff]  ;;  %v1296_v24 = vld [vmem:[%s1536_s1 + $0x40] sm:$0xff]  ;;  %vm446_vm1 = vcmask 261120   ;;  %vm652_vm2 = vcmask 1040384  }
  0x17   : > { %859 = vmatprep.subr.mxu0 %v1134_v1  ;;  %894 = vmatprep.subr.mxu1 %v1134_v1  ;;  %s1254_s21 = scalar_lea.vmem %s1535_s0, %s788_s10  ;;  %v1306_v29 = vld [vmem:[%s1536_s1 + $0x38] sm:$0xff]  ;;  %v1316_v34 = vld [vmem:[%s1536_s1 + $0x30] sm:$0xff]  ;;  %v1325_v38 = vld [vmem:[%s1536_s1 + $0x28] sm:$0xff]  ;;  %s1060_s18 = sshll.u32 %s1136_s6, 4  ;;  %s1061_s18 = int_to_ptr.vmem [resolvable:$false] %s1060_s18 }
  0x18   : > { %860 = vmatpush3.msra.mxu0 %v1230_v2  ;;  %895 = vmatpush3.msra.mxu1 %v1230_v2  ;;  %v230_v5 = vld [vmem:[%s1254_s21] sm:$0xff]  ;;  %v231_v6 = vld [vmem:[%s1254_s21 + $0x8] sm:$0xff]  ;;  %v232_v7 = vld [vmem:[%s1254_s21 + $0x10] sm:$0xff]  ;;  %s1062_s7 = scalar_lea.vmem %s1061_s18, 64 }
  0x19   : > { %861 = vmatprep.subr.mxu0 %v1134_v1  ;;  %896 = vmatprep.subr.mxu1 %v1134_v1  ;;  %v233_v9 = vld [vmem:[%s1254_s21 + $0x18] sm:$0xff]  ;;  %v239_v10 = vadd.f32 %v231_v6, %v230_v5  ;;  %v255_v11 = vmul.f32 %v230_v5, %v230_v5  ;;  %v256_v12 = vmul.f32 %v231_v6, %v231_v6  ;;  %v234_v15 = vld [vmem:[%s1254_s21 + $0x20] sm:$0xff]  ;;  %v235_v20 = vld [vmem:[%s1254_s21 + $0x28] sm:$0xff] }
  0x1a   : > { %862 = vmatpush3.msra.mxu0 %v1240_v3  ;;  %897 = vmatpush3.msra.mxu1 %v1240_v3  ;;  %v257_v13 = vmul.f32 %v232_v7, %v232_v7  ;;  %v258_v17 = vmul.f32 %v233_v9, %v233_v9  ;;  %v259_v22 = vmul.f32 %v234_v15, %v234_v15  ;;  %v236_v25 = vld [vmem:[%s1254_s21 + $0x30] sm:$0xff]  ;;  %v237_v30 = vld [vmem:[%s1254_s21 + $0x38] sm:$0xff]  ;;  %v1334_v41 = vld [vmem:[%s1536_s1 + $0x20] sm:$0xff]  ;;  %s213_s21 = scalar_lea.vmem [#allocation4], %s747_s11 }
  0x1b   : > { %863 = vmatprep.subr.mxu0 %v1134_v1  ;;  %898 = vmatprep.subr.mxu1 %v1134_v1  ;;  %v240_v16 = vadd.f32 %v239_v10, %v232_v7  ;;  %v263_v18 = vadd.f32 %v256_v12, %v255_v11  ;;  %v260_v27 = vmul.f32 %v235_v20, %v235_v20  ;;  %v1343_v44 = vld [vmem:[%s1536_s1 + $0x18] sm:$0xff]  ;;  %v1352_v47 = vld [vmem:[%s1536_s1 + $0x10] sm:$0xff]  ;;  %v1361_v50 = vld [vmem:[%s1536_s1 + $0x8] sm:$0xff]  ;;  %s669_s22 = sshll.u32 %s213_s21, 4  ;;  %s670_s22 = int_to_ptr.vmem [resolvable:$true] %s669_s22 }
  0x1c   : > { %864 = vmatpush3.msra.mxu0 %v1249_v4  ;;  %899 = vmatpush3.msra.mxu1 %v1249_v4  ;;  %v261_v32 = vmul.f32 %v236_v25, %v236_v25  ;;  %v262_v36 = vmul.f32 %v237_v30, %v237_v30  ;;  %v1370_v53 = vld [vmem:[%s1536_s1] sm:$0xff]  ;;  %s1056_s5 = scalar_lea.vmem %s670_s22, 32  ;;  %p1063_p1 = scmp.lt.s32.totalorder %s670_s22, %s1061_s18 }
  0x1d   : > { %865 = vmatprep.subr.mxu0 %v1134_v1  ;;  %900 = vmatprep.subr.mxu1 %v1134_v1  ;;  %v241_v21 = vadd.f32 %v240_v16, %v233_v9  ;;  %v264_v23 = vadd.f32 %v263_v18, %v257_v13  ;;  %v238_v55 = vld [vmem:[#allocation2] sm:$0x1]  ;;  %v254_v60 = vld [vmem:[#allocation3] sm:$0x1]  ;;  %p1057_p12 = scmp.ne.s32.totalorder %s670_s22, %s1056_s5  ;;  %p1064_p2 = scmp.lt.s32.totalorder %s1062_s7, %s1056_s5 }
  0x1e   : > { %866 = vmatpush3.msra.mxu0 %v1266_v8  ;;  %901 = vmatpush3.msra.mxu1 %v1266_v8 }
  0x1f   : > { %867 = vmatprep.subr.mxu0 %v1134_v1  ;;  %902 = vmatprep.subr.mxu1 %v1134_v1  ;;  %v242_v26 = vadd.f32 %v241_v21, %v234_v15  ;;  %v265_v28 = vadd.f32 %v264_v23, %v258_v17  ;;  %v641_v15 = vld [vmem:[%s1537_s2] sm:$0x1]  ;;  %p1058_p13 = pnand %p1057_p12, %p1202_p4  ;;  %p1065_p3 = por %p1064_p2, %p1063_p1 }
  0x20   : > { %868 = vmatpush3.msra.mxu0 %v1276_v14  ;;  %903 = vmatpush3.msra.mxu1 %v1276_v14 }
  0x21   : > { %869 = vmatprep.subr.mxu0 %v1134_v1  ;;  %904 = vmatprep.subr.mxu1 %v1134_v1  ;;  %v243_v31 = vadd.f32 %v242_v26, %v235_v20  ;;  %v266_v33 = vadd.f32 %v265_v28, %v259_v22  ;;  %p1059_p0 = pneg %p1058_p13 }
  0x22   : > { %870 = vmatpush3.msra.mxu0 %v1286_v19  ;;  %905 = vmatpush3.msra.mxu1 %v1286_v19 }
  0x23   : > { %871 = vmatprep.subr.mxu0 %v1134_v1  ;;  %906 = vmatprep.subr.mxu1 %v1134_v1  ;;  %v244_v35 = vadd.f32 %v243_v31, %v236_v25  ;;  %v267_v37 = vadd.f32 %v266_v33, %v260_v27  ;;  %p1066_p5 = pnand %p1065_p3, %p1059_p0 }
  0x24   : > { %872 = vmatpush3.msra.mxu0 %v1296_v24  ;;  %907 = vmatpush3.msra.mxu1 %v1296_v24 }
  0x25   : > { %873 = vmatprep.subr.mxu0 %v1134_v1  ;;  %908 = vmatprep.subr.mxu1 %v1134_v1  ;;  %v245_v39 = vadd.f32 %v244_v35, %v237_v30  ;;  %v268_v40 = vadd.f32 %v267_v37, %v261_v32 }
  0x26   : > { %874 = vmatpush3.msra.mxu0 %v1306_v29  ;;  %909 = vmatpush3.msra.mxu1 %v1306_v29 }
  0x27   : > { %875 = vmatprep.subr.mxu0 %v1134_v1  ;;  %910 = vmatprep.subr.mxu1 %v1134_v1  ;;  %v246_v42 = vrot.slane %v245_v39, 4  ;;  %v269_v43 = vadd.f32 %v268_v40, %v262_v36 }
  0x28   : > { %876 = vmatpush3.msra.mxu0 %v1316_v34  ;;  %911 = vmatpush3.msra.mxu1 %v1316_v34 }
  0x29   : > { %877 = vmatprep.subr.mxu0 %v1134_v1  ;;  %912 = vmatprep.subr.mxu1 %v1134_v1  ;;  %v247_v45 = vadd.f32 %v246_v42, %v245_v39  ;;  %v270_v46 = vrot.slane %v269_v43, 4 }
  0x2a   : > { %878 = vmatpush3.msra.mxu0 %v1325_v38  ;;  %913 = vmatpush3.msra.mxu1 %v1325_v38 }
  0x2b   : > { %879 = vmatprep.subr.mxu0 %v1134_v1  ;;  %914 = vmatprep.subr.mxu1 %v1134_v1  ;;  %v248_v48 = vrot.slane %v247_v45, 2  ;;  %v271_v49 = vadd.f32 %v270_v46, %v269_v43 }
  0x2c   : > { %880 = vmatpush3.msra.mxu0 %v1334_v41  ;;  %915 = vmatpush3.msra.mxu1 %v1334_v41 }
  0x2d   : > { %881 = vmatprep.subr.mxu0 %v1134_v1  ;;  %916 = vmatprep.subr.mxu1 %v1134_v1  ;;  %v249_v51 = vadd.f32 %v248_v48, %v247_v45  ;;  %v272_v52 = vrot.slane %v271_v49, 2 }
  0x2e   : > { %882 = vmatpush3.msra.mxu0 %v1343_v44  ;;  %917 = vmatpush3.msra.mxu1 %v1343_v44 }
  0x2f   : > { %883 = vmatprep.subr.mxu0 %v1134_v1  ;;  %918 = vmatprep.subr.mxu1 %v1134_v1  ;;  %v250_v54 = vrot.slane %v249_v51, 1  ;;  %v273_v56 = vadd.f32 %v272_v52, %v271_v49 }
  0x30   : > { %884 = vmatpush3.msra.mxu0 %v1352_v47  ;;  %919 = vmatpush3.msra.mxu1 %v1352_v47 }
  0x31   : > { %885 = vmatprep.subr.mxu0 %v1134_v1  ;;  %920 = vmatprep.subr.mxu1 %v1134_v1  ;;  %v251_v57 = vadd.f32 %v250_v54, %v249_v51  ;;  %v274_v58 = vrot.slane %v273_v56, 1 }
  0x32   : > { %886 = vmatpush3.msra.mxu0 %v1361_v50  ;;  %889 = vmatprep.mubr.msk.f32.mxu0 %vm1135_vm0, %v1134_v1 }
  0x33   : > { %887 = vmatprep.subr.mxu0 %v1134_v1  ;;  %921 = vmatpush3.msra.mxu1 %v1361_v50  ;;  %v252_v59 = vadd.f32 %v251_v57, %v238_v55  ;;  %v275_v61 = vadd.f32 %v274_v58, %v273_v56 }
  0x34   : > { %888 = vmatpush3.msra.mxu0 %v1370_v53  ;;  %922 = vmatprep.subr.mxu1 %v1134_v1 }
  0x35   : > { %923 = vmatpush3.msra.mxu1 %v1370_v53  ;;  %924 = vmatprep.mubr.msk.f32.mxu1 %vm1135_vm0, %v1134_v1  ;;  %253 = vst [vmem:[#allocation2] sm:$0x1] %v252_v59  ;;  %v276_v62 = vadd.f32 %v275_v61, %v254_v60 }
  0x36   : > { %927 = vmatprep.subr.mxu0 %v1134_v1  ;;  %962 = vmatprep.subr.mxu1 %v1134_v1 }
  0x37   : > { %277 = vst [vmem:[#allocation3] sm:$0x1] %v276_v62 }
  0x3c   : > { %v297_v63 = vld [vmem:[#allocation2] sm:$0x1] }
  0x3d   : > { %890 = vmatmul.mubr.f32.vlgmr.msra.gmra.mxu0 %v297_v63 }
  0x3e   : > { %928 = vmatpush3.xpose.msk.msra.mxu0 %vm446_vm1, %v1220_v0  ;;  %959 = vmatprep.mubr.msk.f32.mxu0 %vm1135_vm0, %v1134_v1  ;;  %v368_v5 = vld [vmem:[#allocation3] sm:$0x1] }
  0x3f   : > { %929 = vmatprep.subr.mxu0 %v1134_v1  ;;  %925 = vmatmul.mubr.f32.vlgmr.msra.gmra.mxu1 %v368_v5 }
  0x40   : > { %963 = vmatpush3.xpose.msk.msra.mxu1 %vm446_vm1, %v1220_v0  ;;  %994 = vmatprep.mubr.msk.f32.mxu1 %vm1135_vm0, %v1134_v1 }
  0x41   : > { %964 = vmatprep.subr.mxu1 %v1134_v1 }
  0x42   : > { %930 = vmatpush3.xpose.msk.msra.mxu0 %vm446_vm1, %v1230_v2 }
  0x43   : > { %931 = vmatprep.subr.mxu0 %v1134_v1 }
  0x44   : > { %965 = vmatpush3.xpose.msk.msra.mxu1 %vm446_vm1, %v1230_v2 }
  0x45   : > { %966 = vmatprep.subr.mxu1 %v1134_v1 }
  0x46   : > { %932 = vmatpush3.xpose.msk.msra.mxu0 %vm446_vm1, %v1240_v3 }
  0x47   : > { %933 = vmatprep.subr.mxu0 %v1134_v1 }
  0x48   : > { %967 = vmatpush3.xpose.msk.msra.mxu1 %vm446_vm1, %v1240_v3 }
  0x49   : > { %968 = vmatprep.subr.mxu1 %v1134_v1 }
  0x4a   : > { %934 = vmatpush3.xpose.msk.msra.mxu0 %vm446_vm1, %v1249_v4 }
  0x4b   : > { %935 = vmatprep.subr.mxu0 %v1134_v1 }
  0x4c   : > { %969 = vmatpush3.xpose.msk.msra.mxu1 %vm446_vm1, %v1249_v4 }
  0x4d   : > { %970 = vmatprep.subr.mxu1 %v1134_v1 }
  0x4e   : > { %936 = vmatpush3.xpose.msk.msra.mxu0 %vm446_vm1, %v1266_v8 }
  0x4f   : > { %937 = vmatprep.subr.mxu0 %v1134_v1 }
  0x50   : > { %971 = vmatpush3.xpose.msk.msra.mxu1 %vm446_vm1, %v1266_v8 }
  0x51   : > { %972 = vmatprep.subr.mxu1 %v1134_v1 }
  0x52   : > { %938 = vmatpush3.xpose.msk.msra.mxu0 %vm446_vm1, %v1276_v14 }
  0x53   : > { %939 = vmatprep.subr.mxu0 %v1134_v1 }
  0x54   : > { %973 = vmatpush3.xpose.msk.msra.mxu1 %vm446_vm1, %v1276_v14  ;;  %v647_v14 = vlaneseq }
  0x55   : > { %974 = vmatprep.subr.mxu1 %v1134_v1 }
  0x56   : > { %940 = vmatpush3.xpose.msk.msra.mxu0 %vm446_vm1, %v1286_v19  ;;  %v648_v16 = vshrl.u32 %v647_v14, 7 }
  0x57   : > { %941 = vmatprep.subr.mxu0 %v1134_v1 }
  0x58   : > { %975 = vmatpush3.xpose.msk.msra.mxu1 %vm446_vm1, %v1286_v19  ;;  %v643_v19 = vld [vmem:[%s1538_s3] sm:$0x1]  ;;  %v649_v22 = vsub.s32 0, %v648_v16 }
  0x59   : > { %976 = vmatprep.subr.mxu1 %v1134_v1 }
  0x5a   : > { %942 = vmatpush3.xpose.msk.msra.mxu0 %vm446_vm1, %v1296_v24 }
  0x5b   : > { %943 = vmatprep.subr.mxu0 %v1134_v1 }
  0x5c   : > { %977 = vmatpush3.xpose.msk.msra.mxu1 %vm446_vm1, %v1296_v24 }
  0x5d   : > { %978 = vmatprep.subr.mxu1 %v1134_v1 }
  0x5e   : > { %944 = vmatpush3.xpose.msk.msra.mxu0 %vm446_vm1, %v1306_v29 }
  0x5f   : > { %945 = vmatprep.subr.mxu0 %v1134_v1 }
  0x60   : > { %979 = vmatpush3.xpose.msk.msra.mxu1 %vm446_vm1, %v1306_v29 }
  0x61   : > { %980 = vmatprep.subr.mxu1 %v1134_v1 }
  0x62   : > { %946 = vmatpush3.xpose.msk.msra.mxu0 %vm446_vm1, %v1316_v34 }
  0x63   : > { %947 = vmatprep.subr.mxu0 %v1134_v1 }
  0x64   : > { %981 = vmatpush3.xpose.msk.msra.mxu1 %vm446_vm1, %v1316_v34 }
  0x65   : > { %982 = vmatprep.subr.mxu1 %v1134_v1 }
  0x66   : > { %948 = vmatpush3.xpose.msk.msra.mxu0 %vm446_vm1, %v1325_v38 }
  0x67   : > { %949 = vmatprep.subr.mxu0 %v1134_v1 }
  0x68   : > { %983 = vmatpush3.xpose.msk.msra.mxu1 %vm446_vm1, %v1325_v38 }
  0x69   : > { %984 = vmatprep.subr.mxu1 %v1134_v1 }
  0x6a   : > { %950 = vmatpush3.xpose.msk.msra.mxu0 %vm446_vm1, %v1334_v41 }
  0x6b   : > { %951 = vmatprep.subr.mxu0 %v1134_v1 }
  0x6c   : > { %985 = vmatpush3.xpose.msk.msra.mxu1 %vm446_vm1, %v1334_v41 }
  0x6d   : > { %986 = vmatprep.subr.mxu1 %v1134_v1 }
  0x6e   : > { %952 = vmatpush3.xpose.msk.msra.mxu0 %vm446_vm1, %v1343_v44 }
  0x6f   : > { %953 = vmatprep.subr.mxu0 %v1134_v1 }
  0x70   : > { %987 = vmatpush3.xpose.msk.msra.mxu1 %vm446_vm1, %v1343_v44 }
  0x71   : > { %988 = vmatprep.subr.mxu1 %v1134_v1 }
  0x72   : > { %954 = vmatpush3.xpose.msk.msra.mxu0 %vm446_vm1, %v1352_v47 }
  0x73   : > { %955 = vmatprep.subr.mxu0 %v1134_v1 }
  0x74   : > { %989 = vmatpush3.xpose.msk.msra.mxu1 %vm446_vm1, %v1352_v47 }
  0x75   : > { %990 = vmatprep.subr.mxu1 %v1134_v1 }
  0x76   : > { %956 = vmatpush3.xpose.msk.msra.mxu0 %vm446_vm1, %v1361_v50 }
  0x77   : > { %957 = vmatprep.subr.mxu0 %v1134_v1 }
  0x78   : > { %991 = vmatpush3.xpose.msk.msra.mxu1 %vm446_vm1, %v1361_v50 }
  0x79   : > { %992 = vmatprep.subr.mxu1 %v1134_v1 }
  0x7a   : > { %958 = vmatpush3.xpose.msk.msra.mxu0 %vm446_vm1, %v1370_v53 }
  0x7c   : > { %993 = vmatpush3.xpose.msk.msra.mxu1 %vm446_vm1, %v1370_v53 }
  0xfd   : > { %v364_v0 = vpop.f32.mrf.mxu0 }
  0xfe   : > { %v439_v2 = vmul.f32 0.00390625, %v364_v0 }
  0xff   : > { %v891_v3 = vpop.f32.mrf.mxu0  ;;  %v435_v6 = vpop.f32.mrf.mxu1 }
 0x100   : > { %v441_v4 = vmul.f32 %v439_v2, %v439_v2  ;;  %960 = vmatmul.mubr.msk.f32.vlgmr.msra.gmra.mxu0 %vm446_vm1, %v439_v2  ;;  %v440_v7 = vmul.f32 0.00390625, %v435_v6 }
 0x101   : > { %v926_v8 = vpop.f32.mrf.mxu1 }
 0x102   : > { %v442_v9 = vsub.f32 %v440_v7, %v441_v4 }
 0x104   : > { %v443_v10 = vmax.f32 %v442_v9, 0.0 }
 0x106   : > { %v444_v11 = vadd.f32 1e-05, %v443_v10 }
 0x108   : > { %1054 = vrsqrt.f32 %v444_v11 }
 0x115   : > { %v1055_v12 = vpop.eup %1054 }
 0x116   : > { %995 = vmatmul.mubr.msk.f32.vlgmr.msra.gmra.mxu1 %vm446_vm1, %v1055_v12 }
 0x1c0   : > { %v564_v1 = vpop.f32.mrf.mxu0 }
 0x1c2   : > { %v961_v13 = vpop.f32.mrf.mxu0 }
 0x1d6   : > { %v637_v17 = vpop.f32.mrf.mxu1 }
 0x1d7   : > { %v642_v18 = vmul.f32 %v641_v15, %v637_v17 }
 0x1d8   : > { %v996_v20 = vpop.f32.mrf.mxu1 }
 0x1d9   : > { %v644_v21 = vmul.f32 %v642_v18, %v564_v1 }
 0x1db   : > { %v645_v23 = vsub.f32 %v643_v19, %v644_v21 }
 0x1dd   : > { %v650_v24 = vrot.slane %v645_v23, %v649_v22 }
 0x1df   : > { %v653_v25 = vsel %vm652_vm2, %v642_v18, %v650_v24 }
 0x1e0   : > { %654 = vst [vmem:[%s213_s21] sm:$0x3] %v653_v25 }
 0x1e1   : > { %1069 = shalt.err (!%p1066_p5)
}
 0x1e2   : > { %s1070_s9 = scalar_lea.hbm %s1495_s29, 32  ;;  %s1074_s11 = scalar_lea.hbm %s1539_s4, 64 }
 0x1e3   : > { %p1071_p6 = scmp.ne.s32.totalorder %s1495_s29, %s1070_s9  ;;  %p1075_p10 = scmp.lt.s32.totalorder %s1495_s29, %s1539_s4 }
 0x1e4   : > { %p1076_p11 = scmp.lt.s32.totalorder %s1074_s11, %s1070_s9 }
 0x1e5   : > { %p1072_p7 = pnand %p1071_p6, %p1202_p4 }
 0x1e6   : > { %p1077_p12 = por %p1076_p11, %p1075_p10 }
 0x1e7   : > { %p1073_p9 = pneg %p1072_p7 }
 0x1e9   : > { %p1078_p13 = pnand %p1077_p12, %p1073_p9 }
 0x1eb   : > { %1081 = shalt.err (!%p1078_p13)
}
 0x1ec   : > { %997 = dma.vmem_to_hbm [thread:$0]  (%p1202_p4), %s670_s22, 32, %s1495_s29, %s656_s30  }
 0x1ed PF: > { %p1003_p0 = scmp.ge.s32.totalorder %s1132_s20, 2  ;;  %s681_s14 = sand.u32 1, %s1112_s15  }
 0x1ee   : > { %s682_s21 = scalar_lea.sflag [#allocation5], %s681_s14 }
 0x1ef   : > { %p1000_p1 = pnand %p1003_p0, %p1209_p8 }
 0x1f1   : > { %p1001_p2 = pneg %p1000_p1 }
 0x1f3   : > { %1107 = dma.done.wait (%p1001_p2), %s682_s21, 32  }
 0x1f4   : > { %1109 = vsyncadd (%p1001_p2), %s682_s21, 4294967264  ;;  %s17_s20 = sadd.s32 1, %s1132_s20   ;;  %s1542_s15 = smov %s1116_s16 }
 0x1f5   : > { %p14_p3 = scmp.ge.s32.totalorder %s17_s20, 4   ;;  %s1543_s16 = smov %s1120_s17 }
 0x1f6   : > { %s1544_s17 = smov %s1215_s28  ;;  %s1545_s18 = smov %s1128_s19 }
 0x1f7   : > { %s1546_s19 = smov %s1548_s23  ;;  %16 = sbr.rel (!%p14_p3) target bundleno = 4 (0x4), region = 79 }
 0x1fc   :  { %687 = vsyncpa [#allocation5], 1 }
 0x1fd   :  { %689 = vsyncpa [#allocation5 + $0x1], 1 }

</bundles_post_ra>
